<compile_context>
chip_gen: v7x
topology: tpu7x:2x2x1
jax: 0.10.0
libtpu: 0.0.40
codegen_flags: <defaults>
</compile_context>

<pallas_src>
import functools

import jax
import jax.numpy as jnp
from jax import lax
from jax.experimental import pallas as pl
from jax.experimental.pallas import tpu as pltpu

EPS = 1e-3
_MiB = 1024 * 1024


def _round_up(a, b):
    return ((a + b - 1) // b) * b


def _cdiv(a, b):
    return (a + b - 1) // b


def _tpu_budgets():
    """Generation-aware budgets: (vmem_limit_bytes, resident_budget, target_block_bytes)."""
    cap = 64 * _MiB  # conservative default (v7x-sized) if the query fails
    try:
        info = pltpu.get_tpu_info()
        c = getattr(info, "vmem_capacity_bytes", None)
        if c:
            cap = int(c)
    except Exception:
        pass
    if cap >= 96 * _MiB:
        # v5e / v6e class: 128 MiB physical VMEM -> keep big rows on the 2-pass path.
        return 96 * _MiB, 72 * _MiB, 4 * _MiB
    # v7x class: 64 MiB VMEM per TC, ~3.2 TB/s HBM -> larger streamed blocks, tighter budget.
    return 48 * _MiB, 36 * _MiB, 6 * _MiB


# ---------------------------------------------------------------------------
# Kernels
# ---------------------------------------------------------------------------

def _fullrow_kernel(x_ref, o_ref, *, inv_hw):
    """Normalize each row of a (tr, HW) block; whole row resident. Two-pass stats."""
    x = x_ref[...].astype(jnp.float32)
    mean = jnp.sum(x, axis=-1, keepdims=True) * inv_hw
    xc = x - mean
    var = jnp.sum(xc * xc, axis=-1, keepdims=True) * inv_hw
    inv_std = lax.rsqrt(var + EPS)
    o_ref[...] = (xc * inv_std).astype(o_ref.dtype)


def _stats_kernel(x_ref, scale_ref, shift_ref, pivot_ref, *, inv_hw, hw, hc,
                  pivot_count, needs_mask):
    """Pass 1 (chunked path): pivot-centered sum / sumsq over the HW grid axis.

    At the last chunk the accumulators are finalized in place into
    scale = inv_std and shift = -mean * inv_std.
    """
    j = pl.program_id(1)
    x = x_ref[...].astype(jnp.float32)
    if needs_mask:
        col = j * hc + lax.broadcasted_iota(jnp.int32, x.shape, 1)
        valid = col < hw

    @pl.when(j == 0)
    def _():
        x0 = jnp.where(valid, x, 0.0) if needs_mask else x
        pivot_ref[...] = jnp.sum(x0, axis=-1, keepdims=True) * (1.0 / pivot_count)
        scale_ref[...] = jnp.zeros_like(scale_ref)
        shift_ref[...] = jnp.zeros_like(shift_ref)

    xc = x - pivot_ref[...]
    if needs_mask:
        xc = jnp.where(valid, xc, 0.0)
    scale_ref[...] = scale_ref[...] + jnp.sum(xc, axis=-1, keepdims=True)
    shift_ref[...] = shift_ref[...] + jnp.sum(xc * xc, axis=-1, keepdims=True)

    @pl.when(j == pl.num_programs(1) - 1)
    def _():
        d = scale_ref[...] * inv_hw                                   # mean - pivot
        var = jnp.maximum(shift_ref[...] * inv_hw - d * d, 0.0)
        inv_std = lax.rsqrt(var + EPS)
        mean = pivot_ref[...] + d
        scale_ref[...] = inv_std
        shift_ref[...] = -mean * inv_std


def _normalize_chunk_kernel(x_ref, scale_ref, shift_ref, o_ref):
    """Pass 2 (chunked path): pure x*scale + shift stream."""
    x = x_ref[...].astype(jnp.float32)
    o_ref[...] = (x * scale_ref[...] + shift_ref[...]).astype(o_ref.dtype)


# ---------------------------------------------------------------------------
# Wrapper
# ---------------------------------------------------------------------------

def ltfgc_cn_forward(x, *, force_chunked=False, hw_chunk=None):
    """InstanceNorm2d(eps=1e-3, affine=False) forward. x: (N, C, H, W)."""
    N, C, H, W = x.shape
    NC, HW = N * C, H * W
    itemsize = jnp.dtype(x.dtype).itemsize
    row_align = 8 * max(1, 4 // itemsize)          # sublane packing for sub-32-bit dtypes
    inv_hw = 1.0 / float(HW)

    vmem_limit, resident_budget, target_block = _tpu_budgets()
    # Per-element resident VMEM: 2x in + 2x out double buffers (+ f32 upcast temps).
    res_per_elem = 4 * itemsize + (8 if itemsize < 4 else 4)

    x2 = x.reshape(NC, HW)

    min_tr = NC if NC < row_align else row_align
    use_fullrow = (min_tr * HW * res_per_elem <= resident_budget) and not force_chunked

    if use_fullrow:
        if NC <= row_align:
            tr = NC  # block row-dim equals the full array dim (always legal)
        else:
            tr_stream = max(1, target_block // max(1, HW * itemsize))
            tr_vmem = max(1, resident_budget // max(1, HW * res_per_elem))
            tr = min(tr_stream, tr_vmem, NC)
            tr = max(row_align, (tr // row_align) * row_align)
            # Keep >=2 (ideally >=4) grid steps on the parallel axis (megacore on v7x).
            if NC >= 4 * row_align:
                cap = max(row_align, (NC // 4) // row_align * row_align)
            elif NC >= 2 * row_align:
                cap = max(row_align, (NC // 2) // row_align * row_align)
            else:
                cap = NC
            tr = min(tr, cap)
            # Prefer a tile that divides NC exactly (no masked boundary block).
            t = tr
            while t >= row_align:
                if NC % t == 0:
                    tr = t
                    break
                t -= row_align
        grid_rows = _cdiv(NC, tr)

        out = pl.pallas_call(
            functools.partial(_fullrow_kernel, inv_hw=inv_hw),
            out_shape=jax.ShapeDtypeStruct((NC, HW), x.dtype),
            grid_spec=pltpu.PrefetchScalarGridSpec(
                num_scalar_prefetch=0,
                grid=(grid_rows,),
                in_specs=[pl.BlockSpec((tr, HW), lambda i: (i, 0))],
                out_specs=pl.BlockSpec((tr, HW), lambda i: (i, 0)),
            ),
            compiler_params=pltpu.CompilerParams(
                dimension_semantics=("parallel",),
                vmem_limit_bytes=vmem_limit,
            ),
            cost_estimate=pl.CostEstimate(
                flops=6 * NC * HW,
                transcendentals=NC,
                bytes_accessed=2 * NC * HW * itemsize,
            ),
        )(x2)
        return out.reshape(N, C, H, W)

    # ---- chunked-HW path: rows too wide to keep resident in VMEM ----
    tr = NC if NC < row_align else row_align
    if hw_chunk is not None:
        hc = _round_up(max(int(hw_chunk), 128), 128)
    else:
        target_hc = max(128, target_block // max(1, tr * itemsize))
        n_chunks = _cdiv(HW, target_hc)
        hc = _round_up(_cdiv(HW, n_chunks), 128)   # balanced: < 128 wasted cols per row
    # Cap chunk so double buffers + f32 upcast temps fit the VMEM budget.
    hc_vmem = max(128, (resident_budget // max(1, tr * res_per_elem)) // 128 * 128)
    hc = min(hc, hc_vmem, _round_up(HW, 128))
    n_chunks = _cdiv(HW, hc)
    needs_mask = (HW % hc) != 0
    grid = (_cdiv(NC, tr), n_chunks)
    pivot_count = float(min(hc, HW))

    stats_shape = jax.ShapeDtypeStruct((NC, 1), jnp.float32)

    # Pass 1: per-row pivot-centered sum / sumsq -> finalized scale / shift.
    scale, shift = pl.pallas_call(
        functools.partial(_stats_kernel, inv_hw=inv_hw, hw=HW, hc=hc,
                          pivot_count=pivot_count, needs_mask=needs_mask),
        out_shape=(stats_shape, stats_shape),
        grid_spec=pltpu.PrefetchScalarGridSpec(
            num_scalar_prefetch=0,
            grid=grid,
            in_specs=[pl.BlockSpec((tr, hc), lambda i, j: (i, j))],
            out_specs=(pl.BlockSpec((tr, 1), lambda i, j: (i, 0)),
                       pl.BlockSpec((tr, 1), lambda i, j: (i, 0))),
            scratch_shapes=[pltpu.VMEM((tr, 1), jnp.float32)],
        ),
        compiler_params=pltpu.CompilerParams(
            dimension_semantics=("parallel", "arbitrary"),
            vmem_limit_bytes=vmem_limit,
        ),
        cost_estimate=pl.CostEstimate(
            flops=4 * NC * HW,
            transcendentals=NC,
            bytes_accessed=NC * HW * itemsize + 8 * NC,
        ),
    )(x2)

    # Pass 2: stream HW chunks and apply x*scale + shift.
    out = pl.pallas_call(
        _normalize_chunk_kernel,
        out_shape=jax.ShapeDtypeStruct((NC, HW), x.dtype),
        grid_spec=pltpu.PrefetchScalarGridSpec(
            num_scalar_prefetch=0,
            grid=grid,
            in_specs=[pl.BlockSpec((tr, hc), lambda i, j: (i, j)),
                      pl.BlockSpec((tr, 1), lambda i, j: (i, 0)),
                      pl.BlockSpec((tr, 1), lambda i, j: (i, 0))],
            out_specs=pl.BlockSpec((tr, hc), lambda i, j: (i, j)),
        ),
        compiler_params=pltpu.CompilerParams(
            dimension_semantics=("parallel", "parallel"),
            vmem_limit_bytes=vmem_limit,
        ),
        cost_estimate=pl.CostEstimate(
            flops=2 * NC * HW,
            transcendentals=0,
            bytes_accessed=2 * NC * HW * itemsize + 8 * NC,
        ),
    )(x2, scale, shift)
    return out.reshape(N, C, H, W)


def ltfgc_cn_reference(x):
    mean = jnp.mean(x, axis=(2, 3), keepdims=True)
    var = jnp.mean((x - mean) ** 2, axis=(2, 3), keepdims=True)  # biased variance
    return (x - mean) / jnp.sqrt(var + EPS)


if __name__ == "__main__":
    key = jax.random.PRNGKey(0)
    # Small NCHW input consistent with the module: batch=2, channels(d)=4, 16x16.
    x = jax.random.normal(key, (2, 4, 16, 16), dtype=jnp.float32)

    out = jax.block_until_ready(ltfgc_cn_forward(x))
    ref = ltfgc_cn_reference(x)
    assert out.shape == x.shape and out.dtype == x.dtype
    assert jnp.allclose(out, ref, atol=1e-4, rtol=1e-4)

    # Boundary-block path: NC not a multiple of 8, HW not a multiple of 128.
    x_odd = jax.random.normal(jax.random.PRNGKey(1), (2, 3, 7, 7), dtype=jnp.float32)
    out_odd = jax.block_until_ready(ltfgc_cn_forward(x_odd))
    assert jnp.allclose(out_odd, ltfgc_cn_reference(x_odd), atol=1e-4, rtol=1e-4)

    # Chunked (two-pass) path with an exact chunk split.
    out_chunked = jax.block_until_ready(
        ltfgc_cn_forward(x, force_chunked=True, hw_chunk=128))
    assert jnp.allclose(out_chunked, ref, atol=1e-4, rtol=1e-4)

    # Chunked path with a masked HW tail (HW = 130 not a multiple of 128).
    x_tail = jax.random.normal(jax.random.PRNGKey(2), (2, 3, 10, 13), dtype=jnp.float32)
    out_tail = jax.block_until_ready(
        ltfgc_cn_forward(x_tail, force_chunked=True, hw_chunk=128))
    assert jnp.allclose(out_tail, ltfgc_cn_reference(x_tail), atol=1e-4, rtol=1e-4)

    print("KERNEL_OK")
</pallas_src>

<mosaic_0001>
module attributes {stable_mosaic.version = 11 : i64} {
  func.func @_fullrow_kernel(%arg0: i32, %arg1: memref<8x256xf32, #tpu.memory_space<vmem>>, %arg2: memref<8x256xf32, #tpu.memory_space<vmem>>) attributes {dimension_semantics = [#tpu.dimension_semantics<parallel>], iteration_bounds = array<i64: 1>, scalar_prefetch = 0 : i64, scratch_operands = 0 : i64, tpu.core_type = #tpu.core_type<tc>, window_params = [{transform_indices = @transform_0, window_bounds = array<i64: 8, 256>}, {transform_indices = @transform_1, window_bounds = array<i64: 8, 256>}]} {
    %c0 = arith.constant 0 : index
    %c0_0 = arith.constant 0 : index
    %0 = vector.load %arg1[%c0, %c0_0] : memref<8x256xf32, #tpu.memory_space<vmem>>, vector<8x256xf32>
    %cst = arith.constant dense<0.000000e+00> : vector<8xf32>
    %1 = vector.multi_reduction <add>, %0, %cst [1] : vector<8x256xf32> to vector<8xf32>
    %2 = vector.shape_cast %1 : vector<8xf32> to vector<8x1xf32>
    %cst_1 = arith.constant 3.906250e-03 : f32
    %3 = vector.broadcast %cst_1 : f32 to vector<8x1xf32>
    %4 = arith.mulf %2, %3 : vector<8x1xf32>
    %5 = vector.broadcast %4 : vector<8x1xf32> to vector<8x256xf32>
    %6 = arith.subf %0, %5 : vector<8x256xf32>
    %7 = arith.mulf %6, %6 : vector<8x256xf32>
    %cst_2 = arith.constant dense<0.000000e+00> : vector<8xf32>
    %8 = vector.multi_reduction <add>, %7, %cst_2 [1] : vector<8x256xf32> to vector<8xf32>
    %9 = vector.shape_cast %8 : vector<8xf32> to vector<8x1xf32>
    %cst_3 = arith.constant 3.906250e-03 : f32
    %10 = vector.broadcast %cst_3 : f32 to vector<8x1xf32>
    %11 = arith.mulf %9, %10 : vector<8x1xf32>
    %cst_4 = arith.constant 1.000000e-03 : f32
    %12 = vector.broadcast %cst_4 : f32 to vector<8x1xf32>
    %13 = arith.addf %11, %12 : vector<8x1xf32>
    %14 = math.rsqrt %13 : vector<8x1xf32>
    %15 = vector.broadcast %14 : vector<8x1xf32> to vector<8x256xf32>
    %16 = arith.mulf %6, %15 : vector<8x256xf32>
    %c0_5 = arith.constant 0 : index
    %c0_6 = arith.constant 0 : index
    %17 = vector.load %arg2[%c0_5, %c0_6] : memref<8x256xf32, #tpu.memory_space<vmem>>, vector<8x256xf32>
    tpu.vector_store %arg2[%c0_5, %c0_6], %16 {strides = array<i32>} : memref<8x256xf32, #tpu.memory_space<vmem>>, vector<8x256xf32>,
    return
  }
  func.func @transform_0(%arg0: i32) -> (i32, i32) {
    %c0_i32 = arith.constant 0 : i32
    %c0_i32_0 = arith.constant 0 : i32
    return %arg0, %c0_i32 : i32, i32
  }
  func.func @transform_1(%arg0: i32) -> (i32, i32) {
    %c0_i32 = arith.constant 0 : i32
    %c0_i32_0 = arith.constant 0 : i32
    return %arg0, %c0_i32 : i32, i32
  }
}

</mosaic_0001>

<bundles_post_ra>
// kernel: tpu_custom_call.1
= control target key start
LH: loop header
LB: loop body
LE: loop exit
PB: predicated region body
PF: predicated region fallthrough
CT: control target
= control target key end

     0   :  { %6 = vsyncpa [#allocation3], 0  ;;  %s144_s0 = inlined_call_operand.hbm [shape: f32[8,256], index: 0, kind: input, shape index: {}]   ;;  %s145_s1 = inlined_call_operand.hbm [shape: f32[8,256], index: 1, kind: output, shape index: {}]  }
   0x1   :  { %7 = vsyncpa [#allocation4], 0  ;;  %s108_s6 = smov [#allocation2]   ;;  %s60_s10 = scalar_lea.hbm %s144_s0, 256 }
   0x2   :  { %s14_s7 = sshll.u32 %s108_s6, 4  ;;  %p61_p0 = scmp.ne.s32.totalorder %s144_s0, %s60_s10  ;;  %s15_s7 = int_to_ptr.vmem [resolvable:$true] %s14_s7 }
   0x3   :  { %p64_p1 = scmp.lt.u32.totalorder %s60_s10, %s144_s0 }
   0x5   :  { %p66_p2 = pnand %p64_p1, %p61_p0 }
   0x7   :  { %69 = shalt.err (!%p66_p2)
}
   0x8   :  { %s70_s15 = scalar_lea.vmem %s15_s7, 256  ;;  %p75_p4 = scmp.lt.s32.totalorder %s15_s7, %s15_s7 }
   0x9   :  { %p71_p3 = scmp.ne.s32.totalorder %s15_s7, %s70_s15  ;;  %p76_p5 = scmp.lt.s32.totalorder %s70_s15, %s70_s15 }
   0xb   :  { %p77_p6 = por %p76_p5, %p75_p4 }
   0xd   :  { %p78_p7 = pnand %p77_p6, %p71_p3 }
   0xf   :  { %81 = shalt.err (!%p78_p7)
}
  0x10   :  { %17 = dma.hbm_to_vmem [thread:$0]  %s144_s0, 256, %s15_s7, [#allocation3]  }
  0x11   :  { %104 = dma.done.wait [#allocation3], 256  }
  0x12   :  { %105 = vsyncadd [#allocation3], 4294967040  ;;  %v21_v0 = vld [vmem:[#allocation2] sm:$0xff]  ;;  %v22_v1 = vld [vmem:[#allocation2 + $0x8] sm:$0xff]  ;;  %s109_s18 = smov [#allocation5]  }
  0x13   :  { %v23_v2 = vadd.f32 %v22_v1, %v21_v0  ;;  %s47_s0 = sshll.u32 %s109_s18, 4  ;;  %s48_s0 = int_to_ptr.vmem [resolvable:$true] %s47_s0 }
  0x14   :  { %s82_s19 = scalar_lea.vmem %s48_s0, 256  ;;  %p87_p9 = scmp.lt.s32.totalorder %s48_s0, %s48_s0 }
  0x15   :  { %24 = vadd.xlane.f32.xlu0 %v23_v2  ;;  %p83_p8 = scmp.ne.s32.totalorder %s48_s0, %s82_s19  ;;  %p88_p10 = scmp.lt.s32.totalorder %s82_s19, %s82_s19 }
  0x17   :  { %p89_p11 = por %p88_p10, %p87_p9 }
  0x19   :  { %p90_p12 = pnand %p89_p11, %p83_p8 }
  0xa2   :  { %v25_v3 = vpop.xlane.xlu0 %24 }
  0xa3   :  { %v26_v4 = vmul.f32 0.00390625, %v25_v3 }
  0xa5   :  { %v27_v5 = vsub.f32 %v21_v0, %v26_v4  ;;  %v28_v6 = vsub.f32 %v22_v1, %v26_v4 }
  0xa7   :  { %v29_v7 = vmul.f32 %v27_v5, %v27_v5  ;;  %v30_v8 = vmul.f32 %v28_v6, %v28_v6 }
  0xa9   :  { %v31_v9 = vadd.f32 %v30_v8, %v29_v7 }
  0xab   :  { %32 = vadd.xlane.f32.xlu0 %v31_v9 }
 0x138   :  { %v33_v10 = vpop.xlane.xlu0 %32 }
 0x139   :  { %v34_v11 = vmul.f32 0.00390625, %v33_v10 }
 0x13b   :  { %v35_v12 = vadd.f32 0.001, %v34_v11 }
 0x13d   :  { %58 = vrsqrt.f32 %v35_v12 }
 0x147   :  { %v59_v13 = vpop.eup %58 }
 0x148   :  { %v37_v14 = vmul.f32 %v59_v13, %v27_v5  ;;  %v38_v15 = vmul.f32 %v59_v13, %v28_v6 }
 0x14a   :  { %39 = vst [vmem:[#allocation5] sm:$0xff] %v37_v14  ;;  %40 = vst [vmem:[#allocation5 + $0x8] sm:$0xff] %v38_v15 }
 0x14b   :  { %93 = shalt.err (!%p90_p12)
}
 0x14c   :  { %s94_s22 = scalar_lea.hbm %s145_s1, 256 }
 0x14d   :  { %p95_p13 = scmp.ne.s32.totalorder %s145_s1, %s94_s22  ;;  %p98_p0 = scmp.lt.u32.totalorder %s94_s22, %s145_s1 }
 0x14f   :  { %p100_p1 = pnand %p98_p0, %p95_p13 }
 0x151   :  { %103 = shalt.err (!%p100_p1)
}
 0x152   :  { %50 = dma.vmem_to_hbm [thread:$0]  %s48_s0, 256, %s145_s1, [#allocation4]  }
 0x153   :  { %106 = dma.done.wait [#allocation4], 256  }
 0x154   :  { %107 = vsyncadd [#allocation4], 4294967040 }
 0x155   :  { %54 = vsyncpa [#allocation3], 1 }
 0x156   :  { %55 = vsyncpa [#allocation4], 1 }

</bundles_post_ra>
